<compile_context>
chip_gen: v7x
topology: tpu7x:2x2x1
jax: 0.10.0
libtpu: 0.0.40
codegen_flags: <defaults>
</compile_context>

<pallas_src>
import jax
import jax.numpy as jnp
from jax.experimental import pallas as pl
from jax.experimental.pallas import tpu as pltpu

_LANE = 128
_SUBLANE = 8
_VMEM_LIMIT_BYTES = 32 * 1024 * 1024  # explicit; safe on v5e/v6e/v7x


def _round_up(n, m):
    return ((n + m - 1) // m) * m


def classifier_kernel(x_ref, wt_ref, b_ref, o_ref):
    x = x_ref[...]                                    # [TB, F]  f32
    wt = wt_ref[...]                                  # [F, C]   f32 (pre-transposed)
    b = b_ref[...]                                    # [1, C]   f32

    # logits[i, c] = sum_f x[i, f] * wt[f, c] + b[c]  -> plain NN MXU contraction.
    logits = jnp.dot(x, wt, preferred_element_type=jnp.float32) + b   # [TB, C]

    # Numerically-stable softmax over classes.
    m = jnp.max(logits, axis=1, keepdims=True)        # [TB, 1]
    e = jnp.exp(logits - m)                           # [TB, C]
    denom = jnp.sum(e, axis=1, keepdims=True)         # [TB, 1]
    o_ref[...] = (e / denom).astype(o_ref.dtype)


def prepare_classifier_params(weight, bias):
    """One-time parameter preparation (hoisted out of the per-call path).

    weight: [C, F] (PyTorch nn.Linear layout) -> [F, C] f32
    bias:   [C]                               -> [1, C] f32
    """
    wt = jnp.asarray(weight, jnp.float32).T
    b2d = jnp.asarray(bias, jnp.float32).reshape(1, -1)
    return wt, b2d


def _choose_batch_tile(B, F, C, vmem_limit_bytes):
    # VMEM bytes per batch row: double-buffered x + double-buffered output
    # (output occupies a lane-padded layout in VMEM even at logical width C).
    c_lanes = _round_up(C, _LANE)
    bytes_per_row = 2 * 4 * (F + c_lanes)
    tb = (vmem_limit_bytes // 2) // max(bytes_per_row, 1)
    tb = max(_SUBLANE, min(tb, 8192))
    # v7x has 2 TensorCores: keep >=2 "parallel" grid steps when B allows it.
    tb = min(tb, _round_up(pl.cdiv(B, 2), _SUBLANE))
    # Never exceed the (sublane-rounded) batch itself.
    tb = min(tb, _round_up(B, _SUBLANE))
    return _round_up(tb, _SUBLANE)


def classifier_forward(x, wt, b2d):
    """x: [B, F] f32; wt: [F, C] (prepared); b2d: [1, C] (prepared)."""
    B, F = x.shape
    C = wt.shape[1]

    x = x.astype(jnp.float32)
    TB = _choose_batch_tile(B, F, C, _VMEM_LIMIT_BYTES)
    grid = (pl.cdiv(B, TB),)   # ragged last block handled by Pallas; no x padding

    out = pl.pallas_call(
        classifier_kernel,
        out_shape=jax.ShapeDtypeStruct((B, C), jnp.float32),
        grid=grid,
        in_specs=[
            pl.BlockSpec((TB, F), lambda i: (i, 0)),   # x: streamed over batch
            pl.BlockSpec((F, C), lambda i: (0, 0)),    # weight: VMEM-resident
            pl.BlockSpec((1, C), lambda i: (0, 0)),    # bias:   VMEM-resident
        ],
        out_specs=pl.BlockSpec((TB, C), lambda i: (i, 0)),
        compiler_params=pltpu.CompilerParams(
            dimension_semantics=("parallel",),
            vmem_limit_bytes=_VMEM_LIMIT_BYTES,
        ),
        cost_estimate=pl.CostEstimate(
            flops=2 * B * F * C,
            transcendentals=B * C,
            bytes_accessed=4 * (B * F + F * C + C + B * C),
        ),
    )(x, wt, b2d)

    return out


if __name__ == "__main__":
    # Small shapes consistent with the module: batch=8, FEATURE_SIZE=32, N_CLASSES=16.
    B, FEATURE_SIZE, N_CLASSES = 8, 32, 16

    key = jax.random.PRNGKey(0)
    kx, kw, kb = jax.random.split(key, 3)

    x = jax.random.normal(kx, (B, FEATURE_SIZE), dtype=jnp.float32)

    # Deterministic parameter init matching nn.Linear's U(-1/sqrt(in), 1/sqrt(in)).
    bound = 1.0 / (FEATURE_SIZE ** 0.5)
    weight = jax.random.uniform(
        kw, (N_CLASSES, FEATURE_SIZE), minval=-bound, maxval=bound, dtype=jnp.float32
    )
    bias = jax.random.uniform(
        kb, (N_CLASSES,), minval=-bound, maxval=bound, dtype=jnp.float32
    )

    # One-time parameter preparation (transpose / reshape hoisted out of forward).
    wt, b2d = prepare_classifier_params(weight, bias)

    out = classifier_forward(x, wt, b2d)
    out = jax.block_until_ready(out)

    # Sanity check against pure-JAX reference.
    ref = jax.nn.softmax(x @ weight.T + bias, axis=1)
    assert out.shape == (B, N_CLASSES)
    assert jnp.allclose(out, ref, atol=1e-5, rtol=1e-5)
    assert jnp.allclose(jnp.sum(out, axis=1), 1.0, atol=1e-5)

    print("KERNEL_OK")
</pallas_src>

<mosaic_0001>
module attributes {stable_mosaic.version = 11 : i64} {
  func.func @classifier_kernel(%arg0: i32, %arg1: memref<8x32xf32, #tpu.memory_space<vmem>>, %arg2: memref<32x16xf32, #tpu.memory_space<vmem>>, %arg3: memref<1x16xf32, #tpu.memory_space<vmem>>, %arg4: memref<8x16xf32, #tpu.memory_space<vmem>>) attributes {dimension_semantics = [#tpu.dimension_semantics<parallel>], iteration_bounds = array<i64: 1>, scalar_prefetch = 0 : i64, scratch_operands = 0 : i64, tpu.core_type = #tpu.core_type<tc>, window_params = [{transform_indices = @transform_0, window_bounds = array<i64: 8, 32>}, {pipeline_mode = #tpu.pipeline_mode<synchronous>, transform_indices = @transform_1, window_bounds = array<i64: 32, 16>}, {pipeline_mode = #tpu.pipeline_mode<synchronous>, transform_indices = @transform_2, window_bounds = array<i64: 1, 16>}, {transform_indices = @transform_3, window_bounds = array<i64: 8, 16>}]} {
    %c0 = arith.constant 0 : index
    %c0_0 = arith.constant 0 : index
    %0 = vector.load %arg1[%c0, %c0_0] : memref<8x32xf32, #tpu.memory_space<vmem>>, vector<8x32xf32>
    %c0_1 = arith.constant 0 : index
    %c0_2 = arith.constant 0 : index
    %1 = vector.load %arg2[%c0_1, %c0_2] : memref<32x16xf32, #tpu.memory_space<vmem>>, vector<32x16xf32>
    %c0_3 = arith.constant 0 : index
    %c0_4 = arith.constant 0 : index
    %2 = vector.load %arg3[%c0_3, %c0_4] : memref<1x16xf32, #tpu.memory_space<vmem>>, vector<1x16xf32>
    %cst = arith.constant dense<0.000000e+00> : vector<8x16xf32>
    %3 = tpu.matmul %0, %1, %cst {dimension_numbers = #tpu.dot_dimension_numbers<[1], [0], [0], [1], [0, 0, 1, 1], [], []>} : vector<8x32xf32>, vector<32x16xf32>, vector<8x16xf32> -> vector<8x16xf32>
    %4 = vector.broadcast %2 : vector<1x16xf32> to vector<8x16xf32>
    %5 = arith.addf %3, %4 : vector<8x16xf32>
    %cst_5 = arith.constant dense<0xFF800000> : vector<8xf32>
    %6 = vector.multi_reduction <maximumf>, %5, %cst_5 [1] : vector<8x16xf32> to vector<8xf32>
    %7 = vector.shape_cast %6 : vector<8xf32> to vector<8x1xf32>
    %8 = vector.broadcast %7 : vector<8x1xf32> to vector<8x16xf32>
    %9 = arith.subf %5, %8 : vector<8x16xf32>
    %10 = math.exp %9 : vector<8x16xf32>
    %cst_6 = arith.constant dense<0.000000e+00> : vector<8xf32>
    %11 = vector.multi_reduction <add>, %10, %cst_6 [1] : vector<8x16xf32> to vector<8xf32>
    %12 = vector.shape_cast %11 : vector<8xf32> to vector<8x1xf32>
    %13 = vector.broadcast %12 : vector<8x1xf32> to vector<8x16xf32>
    %14 = arith.divf %10, %13 : vector<8x16xf32>
    %c0_7 = arith.constant 0 : index
    %c0_8 = arith.constant 0 : index
    %15 = vector.load %arg4[%c0_7, %c0_8] : memref<8x16xf32, #tpu.memory_space<vmem>>, vector<8x16xf32>
    tpu.vector_store %arg4[%c0_7, %c0_8], %14 {strides = array<i32>} : memref<8x16xf32, #tpu.memory_space<vmem>>, vector<8x16xf32>,
    return
  }
  func.func @transform_0(%arg0: i32) -> (i32, i32) {
    %c0_i32 = arith.constant 0 : i32
    %c0_i32_0 = arith.constant 0 : i32
    return %arg0, %c0_i32 : i32, i32
  }
  func.func @transform_1(%arg0: i32) -> (i32, i32) {
    %c0_i32 = arith.constant 0 : i32
    %c0_i32_0 = arith.constant 0 : i32
    %c0_i32_1 = arith.constant 0 : i32
    return %c0_i32, %c0_i32_0 : i32, i32
  }
  func.func @transform_2(%arg0: i32) -> (i32, i32) {
    %c0_i32 = arith.constant 0 : i32
    %c0_i32_0 = arith.constant 0 : i32
    %c0_i32_1 = arith.constant 0 : i32
    return %c0_i32, %c0_i32_0 : i32, i32
  }
  func.func @transform_3(%arg0: i32) -> (i32, i32) {
    %c0_i32 = arith.constant 0 : i32
    %c0_i32_0 = arith.constant 0 : i32
    return %arg0, %c0_i32 : i32, i32
  }
}

</mosaic_0001>

<bundles_post_ra>
// kernel: tpu_custom_call.1
= control target key start
LH: loop header
LB: loop body
LE: loop exit
PB: predicated region body
PF: predicated region fallthrough
CT: control target
= control target key end

     0   :  { %v184_v3 = vmov 0.0|0.0   ;;  %vm185_vm0 = vmmov 0   ;;  %v186_v6 = vmov 0.0   ;;  %s241_s0 = inlined_call_operand.vmem [shape: f32[8,32], index: 0, kind: input, shape index: {}]   ;;  %s242_s1 = inlined_call_operand.vmem [shape: f32[32,16], index: 1, kind: input, shape index: {}]   ;;  %s243_s2 = inlined_call_operand.vmem [shape: f32[1,16], index: 2, kind: input, shape index: {}]   ;;  %s244_s3 = inlined_call_operand.hbm [shape: f32[8,16], index: 3, kind: output, shape index: {}]  }
   0x1   :  { %v16_v0 = vld [vmem:[%s242_s1] sm:$0xff]  ;;  %v17_v1 = vld [vmem:[%s242_s1 + $0x8] sm:$0xff]  ;;  %v18_v2 = vld [vmem:[%s242_s1 + $0x10] sm:$0xff]  ;;  %146 = vmatprep.subr.bf16.mxu0 %v184_v3  ;;  %143 = vmatprep.mubr.msk.f32.mxu0 %vm185_vm0, %v186_v6 }
   0x2   :  { %v147_v4 = vpack.c.bf16 %v17_v1, %v16_v0  ;;  %v19_v5 = vld [vmem:[%s242_s1 + $0x18] sm:$0xff] }
   0x3   :  { %8 = vsyncpa [#allocation3], 0  ;;  %v150_v7 = vpack.c.bf16 %v19_v5, %v18_v2  ;;  %v15_v8 = vld [vmem:[%s241_s0] sm:$0xff]  ;;  %vm27_vm1 = vcmask 261120   ;;  %vm101_vm2 = vcmask 130048   ;;  %s187_s0 = smov [#allocation2]  }
   0x4   :  { %148 = vmatpush3.bf16.msra.mxu0 %v147_v4  ;;  %v128_v9 = vld [vmem:[%s243_s2] ss:$0 sm:$0xff]  ;;  %s120_s1 = sshll.u32 %s187_s0, 4  ;;  %s121_s1 = int_to_ptr.vmem [resolvable:$true] %s120_s1 }
   0x5   :  { %149 = vmatprep.subr.bf16.mxu0 %v184_v3  ;;  %s160_s2 = scalar_lea.vmem %s121_s1, 128  ;;  %p165_p1 = scmp.lt.s32.totalorder %s121_s1, %s121_s1 }
   0x6   :  { %p161_p0 = scmp.ne.s32.totalorder %s121_s1, %s160_s2  ;;  %p166_p2 = scmp.lt.s32.totalorder %s160_s2, %s160_s2 }
   0x8   :  { %151 = vmatpush3.bf16.msra.mxu0 %v150_v7  ;;  %p167_p3 = por %p166_p2, %p165_p1 }
   0xa   :  { %p168_p4 = pnand %p167_p3, %p161_p0 }
   0xb   :  { %144 = vmatmul.mubr.msk.f32.vlgmr.msra.gmra.mrb[0].mxu0 %vm27_vm1, %v15_v8 }
  0xde   :  { %v97_v10 = vpop.f32.mrb[0].mxu0 }
  0xdf   :  { %v98_v11 = vadd.f32 %v128_v9, %v97_v10  ;;  %v145_v12 = vpop.f32.mrb[1].mxu0 }
  0xe1   :  { %v102_v13 = vsel %vm101_vm2, %v98_v11, -inf }
  0xe2   :  { %103 = vmax.xlane.f32.xlu0 %v102_v13 }
 0x16f   :  { %v104_v14 = vpop.xlane.xlu0 %103 }
 0x170   :  { %v105_v15 = vsub.f32 %v98_v11, %v104_v14 }
 0x172   :  { %v106_v16 = vmul.f32 1.442695, %v105_v15 }
 0x174   :  { %156 = vpow2.f32 %v106_v16 }
 0x17e   :  { %v157_v17 = vpop.eup %156 }
 0x17f   :  { %v108_v18 = vsel %vm101_vm2, %v157_v17, 0.0 }
 0x180   :  { %109 = vadd.xlane.f32.xlu0 %v108_v18 }
 0x20d   :  { %v110_v19 = vpop.xlane.xlu0 %109 }
 0x20e   :  { %158 = vrcp.f32 %v110_v19 }
 0x218   :  { %v159_v20 = vpop.eup %158 }
 0x219   :  { %v112_v21 = vmul.f32 %v159_v20, %v157_v17 }
 0x21b   :  { %113 = vst.msk [vmem:[#allocation2] sm:$0xff] %vm101_vm2, %v112_v21 }
 0x21c   :  { %171 = shalt.err (!%p168_p4)
}
 0x21d   :  { %s172_s26 = scalar_lea.hbm %s244_s3, 128 }
 0x21e   :  { %p173_p5 = scmp.ne.s32.totalorder %s244_s3, %s172_s26  ;;  %p176_p6 = scmp.lt.u32.totalorder %s172_s26, %s244_s3 }
 0x220   :  { %p178_p7 = pnand %p176_p6, %p173_p5 }
 0x222   :  { %181 = shalt.err (!%p178_p7)
}
 0x223   :  { %123 = dma.vmem_to_hbm [thread:$0]  %s121_s1, 128, %s244_s3, [#allocation3]  }
 0x224   :  { %182 = dma.done.wait [#allocation3], 128  }
 0x225   :  { %183 = vsyncadd [#allocation3], 4294967168 }
 0x226   :  { %127 = vsyncpa [#allocation3], 1 }

</bundles_post_ra>
